<compile_context>
chip_gen: v7x
topology: tpu7x:2x2x1
jax: 0.10.0
libtpu: 0.0.40
codegen_flags: <defaults>
</compile_context>

<pallas_src>
import math
import jax
import jax.numpy as jnp
from jax.experimental import pallas as pl
from jax.experimental.pallas import tpu as pltpu


# ----------------------------------------------------------------------------
# Kernel
# ----------------------------------------------------------------------------
def _gmmvae_kernel(x_ref, we_ref, be_ref, wh_ref, bh_ref, eps_ref,
                   wd1_ref, bd1_ref, wd2_ref, bd2_ref,
                   z_ref, heads_ref, recon_ref):
    zp = wh_ref.shape[1] // 2          # padded latent width (multiple of 128)
    mm = we_ref.dtype                  # matmul input dtype (f32 or bf16)

    x = x_ref[...]

    # encoder: Linear + ReLU
    h = jnp.dot(x.astype(mm), we_ref[...],
                preferred_element_type=jnp.float32) + be_ref[...]
    h = jnp.maximum(h, 0.0)

    # fused mu/logvar heads: one (TB,H) x (H, 2*Zp) matmul
    heads = jnp.dot(h.astype(mm), wh_ref[...],
                    preferred_element_type=jnp.float32) + bh_ref[...]
    mu = heads[:, :zp]                 # tile-aligned static slices (128-lane)
    logvar = heads[:, zp:]

    # reparameterize (training semantics, eps supplied).  Padded logvar cols
    # are zero -> std=1, padded eps cols are zero -> padded z cols are zero.
    std = jnp.exp(0.5 * logvar)
    z = mu + eps_ref[...] * std

    # decoder: Linear + ReLU, output Linear + Sigmoid (binary=True)
    hd = jnp.dot(z.astype(mm), wd1_ref[...],
                 preferred_element_type=jnp.float32) + bd1_ref[...]
    hd = jnp.maximum(hd, 0.0)
    logits = jnp.dot(hd.astype(mm), wd2_ref[...],
                     preferred_element_type=jnp.float32) + bd2_ref[...]

    # Lane-dense, tile-aligned stores (no in-kernel concat).
    z_ref[...] = z
    heads_ref[...] = heads
    recon_ref[...] = jax.nn.sigmoid(logits.astype(recon_ref.dtype))


# ----------------------------------------------------------------------------
# Tiling / VMEM heuristics
# ----------------------------------------------------------------------------
def _vmem_limit_bytes():
    """Per-generation scoped-VMEM request (~3/4 of capacity)."""
    try:
        cap = getattr(pltpu.get_tpu_info(), "vmem_capacity_bytes", None)
        if cap:
            return int(min(max(cap * 3 // 4, 32 << 20), 96 << 20))
    except Exception:
        pass
    return 48 << 20   # safe everywhere (<= v7x per-TC physical, > scoped default)


def _tb_cap(D_in, H, Zp, vmem_limit, w_itemsize, recon_itemsize):
    """Largest batch tile whose double-buffered I/O tiles fit the budget."""
    resident = 2 * w_itemsize * (D_in * H + H * 2 * Zp + Zp * H + H * D_in)
    resident += 2 * 4 * (2 * H + 2 * Zp + D_in)                 # biases (f32)
    per_row = 2 * (4 * D_in + 4 * Zp                            # x, eps (f32)
                   + 4 * Zp + 4 * 2 * Zp                        # z, heads out
                   + recon_itemsize * D_in)                     # recon out
    budget = vmem_limit - resident - (6 << 20)                  # scratch headroom
    if budget <= 8 * per_row:
        return 8
    return int(min(2048, (budget // per_row) // 8 * 8))


def _pick_tb(B, cap, prefer_blocks=2):
    """Batch tile: multiple of 8, prefers exact divisors of B (no host pad of
    x/eps) and >= prefer_blocks grid steps (keeps both v7x TCs busy)."""
    if B < 8:
        return B, B
    cap = max(8, min((cap // 8) * 8, (B // 8) * 8))
    divisors = [t for t in range(cap, 7, -8) if B % t == 0]
    for t in divisors:
        if B // t >= prefer_blocks:
            return t, B
    if divisors:
        return divisors[0], B
    # No multiple-of-8 divisor: minimize padding, tie-break on larger tile.
    best = min(range(8, cap + 1, 8),
               key=lambda t: (((B + t - 1) // t) * t - B, -t))
    return best, ((B + best - 1) // best) * best


# ----------------------------------------------------------------------------
# Parameter preparation (done once, outside the forward path)
# ----------------------------------------------------------------------------
def prepare_params(params, *, use_bf16_matmul=False):
    """Fuse mu/logvar heads, pad latent dim to 128 lanes, optionally pre-cast
    weights to bf16 (activations are cast inside the kernel)."""
    Z = params["W_mu"].shape[1]
    Zp = -(-Z // 128) * 128
    pad_z = Zp - Z

    W_mu = jnp.pad(params["W_mu"], ((0, 0), (0, pad_z)))
    W_ls = jnp.pad(params["W_logsigma"], ((0, 0), (0, pad_z)))
    W_heads = jnp.concatenate([W_mu, W_ls], axis=1)                      # (H, 2Zp)
    b_heads = jnp.concatenate(
        [jnp.pad(params["b_mu"], ((0, 0), (0, pad_z))),
         jnp.pad(params["b_logsigma"], ((0, 0), (0, pad_z)))], axis=1)   # (1, 2Zp)
    W_dec1 = jnp.pad(params["W_dec1"], ((0, pad_z), (0, 0)))             # (Zp, H)

    wdt = jnp.bfloat16 if use_bf16_matmul else jnp.float32
    return dict(
        W_enc=params["W_enc"].astype(wdt), b_enc=params["b_enc"],
        W_heads=W_heads.astype(wdt), b_heads=b_heads,
        W_dec1=W_dec1.astype(wdt), b_dec1=params["b_dec1"],
        W_dec2=params["W_dec2"].astype(wdt), b_dec2=params["b_dec2"],
        z_dim=Z, use_bf16=use_bf16_matmul,
    )


# ----------------------------------------------------------------------------
# Forward wrapper
# ----------------------------------------------------------------------------
def gmmvae_forward(x, eps, prepared):
    """Fused GMMVAE forward: returns (z, recon_x, mu, logvar)."""
    B, D_in = x.shape
    H = prepared["W_enc"].shape[1]
    Zp = prepared["W_heads"].shape[1] // 2
    Z = prepared["z_dim"]
    use_bf16 = prepared["use_bf16"]
    w_itemsize = 2 if use_bf16 else 4
    recon_dtype = jnp.bfloat16 if use_bf16 else jnp.float32
    recon_itemsize = 2 if use_bf16 else 4

    vmem_limit = _vmem_limit_bytes()
    TB, B_pad = _pick_tb(B, _tb_cap(D_in, H, Zp, vmem_limit,
                                    w_itemsize, recon_itemsize))
    nb = B_pad // TB

    # eps must be lane-padded to Zp (tiny tensor); x is only padded in the
    # rare case no multiple-of-8 divisor of B exists.
    eps = jnp.pad(eps, ((0, B_pad - B), (0, Zp - eps.shape[1])))
    if B_pad != B:
        x = jnp.pad(x, ((0, B_pad - B), (0, 0)))

    inputs = (
        x,
        prepared["W_enc"], prepared["b_enc"],
        prepared["W_heads"], prepared["b_heads"],
        eps,
        prepared["W_dec1"], prepared["b_dec1"],
        prepared["W_dec2"], prepared["b_dec2"],
    )

    def tiled(cols):
        return pl.BlockSpec((TB, cols), lambda i: (i, 0))

    def resident(shape, single_buffer):
        if single_buffer:
            return pl.BlockSpec(shape, lambda i: (0, 0),
                                pipeline_mode=pl.Buffered(1))
        return pl.BlockSpec(shape, lambda i: (0, 0))

    out_shape = (
        jax.ShapeDtypeStruct((B_pad, Zp), jnp.float32),        # z
        jax.ShapeDtypeStruct((B_pad, 2 * Zp), jnp.float32),    # [mu | logvar]
        jax.ShapeDtypeStruct((B_pad, D_in), recon_dtype),      # recon
    )
    out_specs = (tiled(Zp), tiled(2 * Zp), tiled(D_in))

    flops = 2 * B_pad * (D_in * H + H * 2 * Zp + Zp * H + H * D_in)
    transcendentals = B_pad * (Zp + D_in)
    bytes_accessed = (
        4 * B_pad * D_in + 4 * B_pad * Zp
        + w_itemsize * (D_in * H + H * 2 * Zp + Zp * H + H * D_in)
        + 4 * (2 * H + 2 * Zp + D_in)
        + 4 * B_pad * Zp + 4 * B_pad * 2 * Zp
        + recon_itemsize * B_pad * D_in
    )
    cost = pl.CostEstimate(flops=flops, transcendentals=transcendentals,
                           bytes_accessed=bytes_accessed)

    def call(single_buffer_weights):
        in_specs = [
            tiled(D_in),                                        # x
            resident((D_in, H), single_buffer_weights),         # W_enc
            resident((1, H), single_buffer_weights),            # b_enc
            resident((H, 2 * Zp), single_buffer_weights),       # W_heads
            resident((1, 2 * Zp), single_buffer_weights),       # b_heads
            tiled(Zp),                                          # eps
            resident((Zp, H), single_buffer_weights),           # W_dec1
            resident((1, H), single_buffer_weights),            # b_dec1
            resident((H, D_in), single_buffer_weights),         # W_dec2
            resident((1, D_in), single_buffer_weights),         # b_dec2
        ]
        return pl.pallas_call(
            _gmmvae_kernel,
            grid=(nb,),
            in_specs=in_specs,
            out_specs=out_specs,
            out_shape=out_shape,
            compiler_params=pltpu.CompilerParams(
                dimension_semantics=("parallel",),
                vmem_limit_bytes=vmem_limit,
            ),
            cost_estimate=cost,
        )(*inputs)

    try:
        z_p, heads_p, recon_p = call(True)
    except Exception:
        # pl.Buffered(1) not accepted by this jax build -> default buffering.
        z_p, heads_p, recon_p = call(False)

    z = z_p[:B, :Z]
    mu = heads_p[:B, :Z]
    logvar = heads_p[:B, Zp:Zp + Z]
    recon = recon_p[:B] if B_pad != B else recon_p
    return z, recon, mu, logvar


# ----------------------------------------------------------------------------
# PyTorch-style init + pure-JAX reference
# ----------------------------------------------------------------------------
def _linear_init(key, fan_in, fan_out):
    kw, kb = jax.random.split(key)
    bound = 1.0 / math.sqrt(fan_in)
    W = jax.random.uniform(kw, (fan_in, fan_out), jnp.float32, -bound, bound)
    b = jax.random.uniform(kb, (1, fan_out), jnp.float32, -bound, bound)
    return W, b


def make_params(key, input_dim, hidden, z_dim):
    ks = jax.random.split(key, 5)
    W_enc, b_enc = _linear_init(ks[0], input_dim, hidden)       # encoder Linear
    W_mu, b_mu = _linear_init(ks[1], hidden, z_dim)             # _enc_mu
    W_ls, b_ls = _linear_init(ks[2], hidden, z_dim)             # _enc_log_sigma
    W_dec1, b_dec1 = _linear_init(ks[3], z_dim, hidden)         # decoder Linear
    W_dec2, b_dec2 = _linear_init(ks[4], hidden, input_dim)     # _dec
    return dict(W_enc=W_enc, b_enc=b_enc, W_mu=W_mu, b_mu=b_mu,
                W_logsigma=W_ls, b_logsigma=b_ls,
                W_dec1=W_dec1, b_dec1=b_dec1, W_dec2=W_dec2, b_dec2=b_dec2)


def _reference_forward(x, eps, p):
    h = jnp.maximum(x @ p["W_enc"] + p["b_enc"], 0.0)
    mu = h @ p["W_mu"] + p["b_mu"]
    logvar = h @ p["W_logsigma"] + p["b_logsigma"]
    z = mu + eps * jnp.exp(0.5 * logvar)
    hd = jnp.maximum(z @ p["W_dec1"] + p["b_dec1"], 0.0)
    recon = jax.nn.sigmoid(hd @ p["W_dec2"] + p["b_dec2"])
    return z, recon, mu, logvar


# TODO(synk): the numpy GMM/EM machinery (gmmfit, stepwise_e/m_step,
# loss_function, log_marginal_likelihood_estimate) is host-side training code,
# not part of Module.forward, and is intentionally not ported to Pallas.

if __name__ == "__main__":
    B, D_IN, HIDDEN, Z_DIM = 8, 64, 32, 8

    key = jax.random.PRNGKey(0)
    k_x, k_eps, k_p = jax.random.split(key, 3)
    x = jax.random.uniform(k_x, (B, D_IN), jnp.float32)         # binary-ish data
    eps = jax.random.normal(k_eps, (B, Z_DIM), jnp.float32)     # reparam noise
    params = make_params(k_p, D_IN, HIDDEN, Z_DIM)

    # f32 path (default)
    prepared = prepare_params(params)
    z, recon, mu, logvar = gmmvae_forward(x, eps, prepared)
    jax.block_until_ready((z, recon, mu, logvar))

    z_r, recon_r, mu_r, logvar_r = _reference_forward(x, eps, params)
    assert jnp.allclose(z, z_r, atol=1e-4)
    assert jnp.allclose(recon, recon_r, atol=1e-4)
    assert jnp.allclose(mu, mu_r, atol=1e-4)
    assert jnp.allclose(logvar, logvar_r, atol=1e-4)

    # bf16-MXU path (looser tolerance)
    prepared_bf16 = prepare_params(params, use_bf16_matmul=True)
    z_b, recon_b, mu_b, logvar_b = gmmvae_forward(x, eps, prepared_bf16)
    jax.block_until_ready((z_b, recon_b, mu_b, logvar_b))
    assert jnp.allclose(z_b, z_r, atol=0.1, rtol=0.1)
    assert jnp.allclose(recon_b.astype(jnp.float32), recon_r, atol=0.1, rtol=0.1)
    assert jnp.allclose(mu_b, mu_r, atol=0.1, rtol=0.1)
    assert jnp.allclose(logvar_b, logvar_r, atol=0.1, rtol=0.1)

    print("KERNEL_OK")
</pallas_src>

<mosaic_0001>
module attributes {stable_mosaic.version = 11 : i64} {
  func.func @_gmmvae_kernel(%arg0: i32, %arg1: memref<8x64xf32, #tpu.memory_space<vmem>>, %arg2: memref<64x32xf32, #tpu.memory_space<vmem>>, %arg3: memref<1x32xf32, #tpu.memory_space<vmem>>, %arg4: memref<32x256xf32, #tpu.memory_space<vmem>>, %arg5: memref<1x256xf32, #tpu.memory_space<vmem>>, %arg6: memref<8x128xf32, #tpu.memory_space<vmem>>, %arg7: memref<128x32xf32, #tpu.memory_space<vmem>>, %arg8: memref<1x32xf32, #tpu.memory_space<vmem>>, %arg9: memref<32x64xf32, #tpu.memory_space<vmem>>, %arg10: memref<1x64xf32, #tpu.memory_space<vmem>>, %arg11: memref<8x128xf32, #tpu.memory_space<vmem>>, %arg12: memref<8x256xf32, #tpu.memory_space<vmem>>, %arg13: memref<8x64xf32, #tpu.memory_space<vmem>>) attributes {dimension_semantics = [#tpu.dimension_semantics<parallel>], iteration_bounds = array<i64: 1>, scalar_prefetch = 0 : i64, scratch_operands = 0 : i64, tpu.core_type = #tpu.core_type<tc>, window_params = [{transform_indices = @transform_0, window_bounds = array<i64: 8, 64>}, {pipeline_mode = #tpu.pipeline_mode<synchronous>, transform_indices = @transform_1, window_bounds = array<i64: 64, 32>}, {pipeline_mode = #tpu.pipeline_mode<synchronous>, transform_indices = @transform_2, window_bounds = array<i64: 1, 32>}, {pipeline_mode = #tpu.pipeline_mode<synchronous>, transform_indices = @transform_3, window_bounds = array<i64: 32, 256>}, {pipeline_mode = #tpu.pipeline_mode<synchronous>, transform_indices = @transform_4, window_bounds = array<i64: 1, 256>}, {transform_indices = @transform_5, window_bounds = array<i64: 8, 128>}, {pipeline_mode = #tpu.pipeline_mode<synchronous>, transform_indices = @transform_6, window_bounds = array<i64: 128, 32>}, {pipeline_mode = #tpu.pipeline_mode<synchronous>, transform_indices = @transform_7, window_bounds = array<i64: 1, 32>}, {pipeline_mode = #tpu.pipeline_mode<synchronous>, transform_indices = @transform_8, window_bounds = array<i64: 32, 64>}, {pipeline_mode = #tpu.pipeline_mode<synchronous>, transform_indices = @transform_9, window_bounds = array<i64: 1, 64>}, {transform_indices = @transform_10, window_bounds = array<i64: 8, 128>}, {transform_indices = @transform_11, window_bounds = array<i64: 8, 256>}, {transform_indices = @transform_12, window_bounds = array<i64: 8, 64>}]} {
    %c0 = arith.constant 0 : index
    %c0_0 = arith.constant 0 : index
    %0 = vector.load %arg1[%c0, %c0_0] : memref<8x64xf32, #tpu.memory_space<vmem>>, vector<8x64xf32>
    %c0_1 = arith.constant 0 : index
    %c0_2 = arith.constant 0 : index
    %1 = vector.load %arg2[%c0_1, %c0_2] : memref<64x32xf32, #tpu.memory_space<vmem>>, vector<64x32xf32>
    %cst = arith.constant dense<0.000000e+00> : vector<8x32xf32>
    %2 = tpu.matmul %0, %1, %cst {dimension_numbers = #tpu.dot_dimension_numbers<[1], [0], [0], [1], [0, 0, 1, 1], [], []>} : vector<8x64xf32>, vector<64x32xf32>, vector<8x32xf32> -> vector<8x32xf32>
    %c0_3 = arith.constant 0 : index
    %c0_4 = arith.constant 0 : index
    %3 = vector.load %arg3[%c0_3, %c0_4] : memref<1x32xf32, #tpu.memory_space<vmem>>, vector<1x32xf32>
    %4 = vector.broadcast %3 : vector<1x32xf32> to vector<8x32xf32>
    %5 = arith.addf %2, %4 : vector<8x32xf32>
    %cst_5 = arith.constant 0.000000e+00 : f32
    %6 = vector.broadcast %cst_5 : f32 to vector<8x32xf32>
    %7 = arith.maximumf %5, %6 : vector<8x32xf32>
    %c0_6 = arith.constant 0 : index
    %c0_7 = arith.constant 0 : index
    %8 = vector.load %arg4[%c0_6, %c0_7] : memref<32x256xf32, #tpu.memory_space<vmem>>, vector<32x256xf32>
    %cst_8 = arith.constant dense<0.000000e+00> : vector<8x256xf32>
    %9 = tpu.matmul %7, %8, %cst_8 {dimension_numbers = #tpu.dot_dimension_numbers<[1], [0], [0], [1], [0, 0, 1, 1], [], []>} : vector<8x32xf32>, vector<32x256xf32>, vector<8x256xf32> -> vector<8x256xf32>
    %c0_9 = arith.constant 0 : index
    %c0_10 = arith.constant 0 : index
    %10 = vector.load %arg5[%c0_9, %c0_10] : memref<1x256xf32, #tpu.memory_space<vmem>>, vector<1x256xf32>
    %11 = vector.broadcast %10 : vector<1x256xf32> to vector<8x256xf32>
    %12 = arith.addf %9, %11 : vector<8x256xf32>
    %13 = vector.extract_strided_slice %12 {offsets = [0, 0], sizes = [8, 128], strides = [1, 1]} : vector<8x256xf32> to vector<8x128xf32>
    %14 = vector.extract_strided_slice %12 {offsets = [0, 128], sizes = [8, 128], strides = [1, 1]} : vector<8x256xf32> to vector<8x128xf32>
    %cst_11 = arith.constant 5.000000e-01 : f32
    %15 = vector.broadcast %cst_11 : f32 to vector<8x128xf32>
    %16 = arith.mulf %15, %14 : vector<8x128xf32>
    %17 = math.exp %16 : vector<8x128xf32>
    %c0_12 = arith.constant 0 : index
    %c0_13 = arith.constant 0 : index
    %18 = vector.load %arg6[%c0_12, %c0_13] : memref<8x128xf32, #tpu.memory_space<vmem>>, vector<8x128xf32>
    %19 = arith.mulf %18, %17 : vector<8x128xf32>
    %20 = arith.addf %13, %19 : vector<8x128xf32>
    %c0_14 = arith.constant 0 : index
    %c0_15 = arith.constant 0 : index
    %21 = vector.load %arg7[%c0_14, %c0_15] : memref<128x32xf32, #tpu.memory_space<vmem>>, vector<128x32xf32>
    %cst_16 = arith.constant dense<0.000000e+00> : vector<8x32xf32>
    %22 = tpu.matmul %20, %21, %cst_16 {dimension_numbers = #tpu.dot_dimension_numbers<[1], [0], [0], [1], [0, 0, 1, 1], [], []>} : vector<8x128xf32>, vector<128x32xf32>, vector<8x32xf32> -> vector<8x32xf32>
    %c0_17 = arith.constant 0 : index
    %c0_18 = arith.constant 0 : index
    %23 = vector.load %arg8[%c0_17, %c0_18] : memref<1x32xf32, #tpu.memory_space<vmem>>, vector<1x32xf32>
    %24 = vector.broadcast %23 : vector<1x32xf32> to vector<8x32xf32>
    %25 = arith.addf %22, %24 : vector<8x32xf32>
    %cst_19 = arith.constant 0.000000e+00 : f32
    %26 = vector.broadcast %cst_19 : f32 to vector<8x32xf32>
    %27 = arith.maximumf %25, %26 : vector<8x32xf32>
    %c0_20 = arith.constant 0 : index
    %c0_21 = arith.constant 0 : index
    %28 = vector.load %arg9[%c0_20, %c0_21] : memref<32x64xf32, #tpu.memory_space<vmem>>, vector<32x64xf32>
    %cst_22 = arith.constant dense<0.000000e+00> : vector<8x64xf32>
    %29 = tpu.matmul %27, %28, %cst_22 {dimension_numbers = #tpu.dot_dimension_numbers<[1], [0], [0], [1], [0, 0, 1, 1], [], []>} : vector<8x32xf32>, vector<32x64xf32>, vector<8x64xf32> -> vector<8x64xf32>
    %c0_23 = arith.constant 0 : index
    %c0_24 = arith.constant 0 : index
    %30 = vector.load %arg10[%c0_23, %c0_24] : memref<1x64xf32, #tpu.memory_space<vmem>>, vector<1x64xf32>
    %31 = vector.broadcast %30 : vector<1x64xf32> to vector<8x64xf32>
    %32 = arith.addf %29, %31 : vector<8x64xf32>
    %c0_25 = arith.constant 0 : index
    %c0_26 = arith.constant 0 : index
    %33 = vector.load %arg11[%c0_25, %c0_26] : memref<8x128xf32, #tpu.memory_space<vmem>>, vector<8x128xf32>
    tpu.vector_store %arg11[%c0_25, %c0_26], %20 {strides = array<i32>} : memref<8x128xf32, #tpu.memory_space<vmem>>, vector<8x128xf32>,
    %c0_27 = arith.constant 0 : index
    %c0_28 = arith.constant 0 : index
    %34 = vector.load %arg12[%c0_27, %c0_28] : memref<8x256xf32, #tpu.memory_space<vmem>>, vector<8x256xf32>
    tpu.vector_store %arg12[%c0_27, %c0_28], %12 {strides = array<i32>} : memref<8x256xf32, #tpu.memory_space<vmem>>, vector<8x256xf32>,
    %35 = arith.negf %32 : vector<8x64xf32>
    %36 = math.exp %35 : vector<8x64xf32>
    %cst_29 = arith.constant 1.000000e+00 : f32
    %37 = vector.broadcast %cst_29 : f32 to vector<8x64xf32>
    %38 = arith.addf %37, %36 : vector<8x64xf32>
    %39 = arith.divf %37, %38 : vector<8x64xf32>
    %c0_30 = arith.constant 0 : index
    %c0_31 = arith.constant 0 : index
    %40 = vector.load %arg13[%c0_30, %c0_31] : memref<8x64xf32, #tpu.memory_space<vmem>>, vector<8x64xf32>
    tpu.vector_store %arg13[%c0_30, %c0_31], %39 {strides = array<i32>} : memref<8x64xf32, #tpu.memory_space<vmem>>, vector<8x64xf32>,
    return
  }
  func.func @transform_0(%arg0: i32) -> (i32, i32) {
    %c0_i32 = arith.constant 0 : i32
    %c0_i32_0 = arith.constant 0 : i32
    return %arg0, %c0_i32 : i32, i32
  }
  func.func @transform_1(%arg0: i32) -> (i32, i32) {
    %c0_i32 = arith.constant 0 : i32
    %c0_i32_0 = arith.constant 0 : i32
    %c0_i32_1 = arith.constant 0 : i32
    return %c0_i32, %c0_i32_0 : i32, i32
  }
  func.func @transform_2(%arg0: i32) -> (i32, i32) {
    %c0_i32 = arith.constant 0 : i32
    %c0_i32_0 = arith.constant 0 : i32
    %c0_i32_1 = arith.constant 0 : i32
    return %c0_i32, %c0_i32_0 : i32, i32
  }
  func.func @transform_3(%arg0: i32) -> (i32, i32) {
    %c0_i32 = arith.constant 0 : i32
    %c0_i32_0 = arith.constant 0 : i32
    %c0_i32_1 = arith.constant 0 : i32
    return %c0_i32, %c0_i32_0 : i32, i32
  }
  func.func @transform_4(%arg0: i32) -> (i32, i32) {
    %c0_i32 = arith.constant 0 : i32
    %c0_i32_0 = arith.constant 0 : i32
    %c0_i32_1 = arith.constant 0 : i32
    return %c0_i32, %c0_i32_0 : i32, i32
  }
  func.func @transform_5(%arg0: i32) -> (i32, i32) {
    %c0_i32 = arith.constant 0 : i32
    %c0_i32_0 = arith.constant 0 : i32
    return %arg0, %c0_i32 : i32, i32
  }
  func.func @transform_6(%arg0: i32) -> (i32, i32) {
    %c0_i32 = arith.constant 0 : i32
    %c0_i32_0 = arith.constant 0 : i32
    %c0_i32_1 = arith.constant 0 : i32
    return %c0_i32, %c0_i32_0 : i32, i32
  }
  func.func @transform_7(%arg0: i32) -> (i32, i32) {
    %c0_i32 = arith.constant 0 : i32
    %c0_i32_0 = arith.constant 0 : i32
    %c0_i32_1 = arith.constant 0 : i32
    return %c0_i32, %c0_i32_0 : i32, i32
  }
  func.func @transform_8(%arg0: i32) -> (i32, i32) {
    %c0_i32 = arith.constant 0 : i32
    %c0_i32_0 = arith.constant 0 : i32
    %c0_i32_1 = arith.constant 0 : i32
    return %c0_i32, %c0_i32_0 : i32, i32
  }
  func.func @transform_9(%arg0: i32) -> (i32, i32) {
    %c0_i32 = arith.constant 0 : i32
    %c0_i32_0 = arith.constant 0 : i32
    %c0_i32_1 = arith.constant 0 : i32
    return %c0_i32, %c0_i32_0 : i32, i32
  }
  func.func @transform_10(%arg0: i32) -> (i32, i32) {
    %c0_i32 = arith.constant 0 : i32
    %c0_i32_0 = arith.constant 0 : i32
    return %arg0, %c0_i32 : i32, i32
  }
  func.func @transform_11(%arg0: i32) -> (i32, i32) {
    %c0_i32 = arith.constant 0 : i32
    %c0_i32_0 = arith.constant 0 : i32
    return %arg0, %c0_i32 : i32, i32
  }
  func.func @transform_12(%arg0: i32) -> (i32, i32) {
    %c0_i32 = arith.constant 0 : i32
    %c0_i32_0 = arith.constant 0 : i32
    return %arg0, %c0_i32 : i32, i32
  }
}

module attributes {stable_mosaic.version = 11 : i64} {
  func.func @_gmmvae_kernel(%arg0: i32, %arg1: memref<8x64xf32, #tpu.memory_space<vmem>>, %arg2: memref<64x32xf32, #tpu.memory_space<vmem>>, %arg3: memref<1x32xf32, #tpu.memory_space<vmem>>, %arg4: memref<32x256xf32, #tpu.memory_space<vmem>>, %arg5: memref<1x256xf32, #tpu.memory_space<vmem>>, %arg6: memref<8x128xf32, #tpu.memory_space<vmem>>, %arg7: memref<128x32xf32, #tpu.memory_space<vmem>>, %arg8: memref<1x32xf32, #tpu.memory_space<vmem>>, %arg9: memref<32x64xf32, #tpu.memory_space<vmem>>, %arg10: memref<1x64xf32, #tpu.memory_space<vmem>>, %arg11: memref<8x128xf32, #tpu.memory_space<vmem>>, %arg12: memref<8x256xf32, #tpu.memory_space<vmem>>, %arg13: memref<8x64xf32, #tpu.memory_space<vmem>>) attributes {dimension_semantics = [#tpu.dimension_semantics<parallel>], iteration_bounds = array<i64: 1>, scalar_prefetch = 0 : i64, scratch_operands = 0 : i64, tpu.core_type = #tpu.core_type<tc>, window_params = [{transform_indices = @transform_0, window_bounds = array<i64: 8, 64>}, {pipeline_mode = #tpu.pipeline_mode<synchronous>, transform_indices = @transform_1, window_bounds = array<i64: 64, 32>}, {pipeline_mode = #tpu.pipeline_mode<synchronous>, transform_indices = @transform_2, window_bounds = array<i64: 1, 32>}, {pipeline_mode = #tpu.pipeline_mode<synchronous>, transform_indices = @transform_3, window_bounds = array<i64: 32, 256>}, {pipeline_mode = #tpu.pipeline_mode<synchronous>, transform_indices = @transform_4, window_bounds = array<i64: 1, 256>}, {transform_indices = @transform_5, window_bounds = array<i64: 8, 128>}, {pipeline_mode = #tpu.pipeline_mode<synchronous>, transform_indices = @transform_6, window_bounds = array<i64: 128, 32>}, {pipeline_mode = #tpu.pipeline_mode<synchronous>, transform_indices = @transform_7, window_bounds = array<i64: 1, 32>}, {pipeline_mode = #tpu.pipeline_mode<synchronous>, transform_indices = @transform_8, window_bounds = array<i64: 32, 64>}, {pipeline_mode = #tpu.pipeline_mode<synchronous>, transform_indices = @transform_9, window_bounds = array<i64: 1, 64>}, {transform_indices = @transform_10, window_bounds = array<i64: 8, 128>}, {transform_indices = @transform_11, window_bounds = array<i64: 8, 256>}, {transform_indices = @transform_12, window_bounds = array<i64: 8, 64>}]} {
    %c0 = arith.constant 0 : index
    %c0_0 = arith.constant 0 : index
    %0 = vector.load %arg1[%c0, %c0_0] : memref<8x64xf32, #tpu.memory_space<vmem>>, vector<8x64xf32>
    %c0_1 = arith.constant 0 : index
    %c0_2 = arith.constant 0 : index
    %1 = vector.load %arg2[%c0_1, %c0_2] : memref<64x32xf32, #tpu.memory_space<vmem>>, vector<64x32xf32>
    %cst = arith.constant dense<0.000000e+00> : vector<8x32xf32>
    %2 = tpu.matmul %0, %1, %cst {dimension_numbers = #tpu.dot_dimension_numbers<[1], [0], [0], [1], [0, 0, 1, 1], [], []>} : vector<8x64xf32>, vector<64x32xf32>, vector<8x32xf32> -> vector<8x32xf32>
    %c0_3 = arith.constant 0 : index
    %c0_4 = arith.constant 0 : index
    %3 = vector.load %arg3[%c0_3, %c0_4] : memref<1x32xf32, #tpu.memory_space<vmem>>, vector<1x32xf32>
    %4 = vector.broadcast %3 : vector<1x32xf32> to vector<8x32xf32>
    %5 = arith.addf %2, %4 : vector<8x32xf32>
    %cst_5 = arith.constant 0.000000e+00 : f32
    %6 = vector.broadcast %cst_5 : f32 to vector<8x32xf32>
    %7 = arith.maximumf %5, %6 : vector<8x32xf32>
    %c0_6 = arith.constant 0 : index
    %c0_7 = arith.constant 0 : index
    %8 = vector.load %arg4[%c0_6, %c0_7] : memref<32x256xf32, #tpu.memory_space<vmem>>, vector<32x256xf32>
    %cst_8 = arith.constant dense<0.000000e+00> : vector<8x256xf32>
    %9 = tpu.matmul %7, %8, %cst_8 {dimension_numbers = #tpu.dot_dimension_numbers<[1], [0], [0], [1], [0, 0, 1, 1], [], []>} : vector<8x32xf32>, vector<32x256xf32>, vector<8x256xf32> -> vector<8x256xf32>
    %c0_9 = arith.constant 0 : index
    %c0_10 = arith.constant 0 : index
    %10 = vector.load %arg5[%c0_9, %c0_10] : memref<1x256xf32, #tpu.memory_space<vmem>>, vector<1x256xf32>
    %11 = vector.broadcast %10 : vector<1x256xf32> to vector<8x256xf32>
    %12 = arith.addf %9, %11 : vector<8x256xf32>
    %13 = vector.extract_strided_slice %12 {offsets = [0, 0], sizes = [8, 128], strides = [1, 1]} : vector<8x256xf32> to vector<8x128xf32>
    %14 = vector.extract_strided_slice %12 {offsets = [0, 128], sizes = [8, 128], strides = [1, 1]} : vector<8x256xf32> to vector<8x128xf32>
    %cst_11 = arith.constant 5.000000e-01 : f32
    %15 = vector.broadcast %cst_11 : f32 to vector<8x128xf32>
    %16 = arith.mulf %15, %14 : vector<8x128xf32>
    %17 = math.exp %16 : vector<8x128xf32>
    %c0_12 = arith.constant 0 : index
    %c0_13 = arith.constant 0 : index
    %18 = vector.load %arg6[%c0_12, %c0_13] : memref<8x128xf32, #tpu.memory_space<vmem>>, vector<8x128xf32>
    %19 = arith.mulf %18, %17 : vector<8x128xf32>
    %20 = arith.addf %13, %19 : vector<8x128xf32>
    %c0_14 = arith.constant 0 : index
    %c0_15 = arith.constant 0 : index
    %21 = vector.load %arg7[%c0_14, %c0_15] : memref<128x32xf32, #tpu.memory_space<vmem>>, vector<128x32xf32>
    %cst_16 = arith.constant dense<0.000000e+00> : vector<8x32xf32>
    %22 = tpu.matmul %20, %21, %cst_16 {dimension_numbers = #tpu.dot_dimension_numbers<[1], [0], [0], [1], [0, 0, 1, 1], [], []>} : vector<8x128xf32>, vector<128x32xf32>, vector<8x32xf32> -> vector<8x32xf32>
    %c0_17 = arith.constant 0 : index
    %c0_18 = arith.constant 0 : index
    %23 = vector.load %arg8[%c0_17, %c0_18] : memref<1x32xf32, #tpu.memory_space<vmem>>, vector<1x32xf32>
    %24 = vector.broadcast %23 : vector<1x32xf32> to vector<8x32xf32>
    %25 = arith.addf %22, %24 : vector<8x32xf32>
    %cst_19 = arith.constant 0.000000e+00 : f32
    %26 = vector.broadcast %cst_19 : f32 to vector<8x32xf32>
    %27 = arith.maximumf %25, %26 : vector<8x32xf32>
    %c0_20 = arith.constant 0 : index
    %c0_21 = arith.constant 0 : index
    %28 = vector.load %arg9[%c0_20, %c0_21] : memref<32x64xf32, #tpu.memory_space<vmem>>, vector<32x64xf32>
    %cst_22 = arith.constant dense<0.000000e+00> : vector<8x64xf32>
    %29 = tpu.matmul %27, %28, %cst_22 {dimension_numbers = #tpu.dot_dimension_numbers<[1], [0], [0], [1], [0, 0, 1, 1], [], []>} : vector<8x32xf32>, vector<32x64xf32>, vector<8x64xf32> -> vector<8x64xf32>
    %c0_23 = arith.constant 0 : index
    %c0_24 = arith.constant 0 : index
    %30 = vector.load %arg10[%c0_23, %c0_24] : memref<1x64xf32, #tpu.memory_space<vmem>>, vector<1x64xf32>
    %31 = vector.broadcast %30 : vector<1x64xf32> to vector<8x64xf32>
    %32 = arith.addf %29, %31 : vector<8x64xf32>
    %c0_25 = arith.constant 0 : index
    %c0_26 = arith.constant 0 : index
    %33 = vector.load %arg11[%c0_25, %c0_26] : memref<8x128xf32, #tpu.memory_space<vmem>>, vector<8x128xf32>
    tpu.vector_store %arg11[%c0_25, %c0_26], %20 {strides = array<i32>} : memref<8x128xf32, #tpu.memory_space<vmem>>, vector<8x128xf32>,
    %c0_27 = arith.constant 0 : index
    %c0_28 = arith.constant 0 : index
    %34 = vector.load %arg12[%c0_27, %c0_28] : memref<8x256xf32, #tpu.memory_space<vmem>>, vector<8x256xf32>
    tpu.vector_store %arg12[%c0_27, %c0_28], %12 {strides = array<i32>} : memref<8x256xf32, #tpu.memory_space<vmem>>, vector<8x256xf32>,
    %35 = arith.negf %32 : vector<8x64xf32>
    %36 = math.exp %35 : vector<8x64xf32>
    %cst_29 = arith.constant 1.000000e+00 : f32
    %37 = vector.broadcast %cst_29 : f32 to vector<8x64xf32>
    %38 = arith.addf %37, %36 : vector<8x64xf32>
    %39 = arith.divf %37, %38 : vector<8x64xf32>
    %c0_30 = arith.constant 0 : index
    %c0_31 = arith.constant 0 : index
    %40 = vector.load %arg13[%c0_30, %c0_31] : memref<8x64xf32, #tpu.memory_space<vmem>>, vector<8x64xf32>
    tpu.vector_store %arg13[%c0_30, %c0_31], %39 {strides = array<i32>} : memref<8x64xf32, #tpu.memory_space<vmem>>, vector<8x64xf32>,
    return
  }
  func.func @transform_0(%arg0: i32) -> (i32, i32) {
    %c0_i32 = arith.constant 0 : i32
    %c0_i32_0 = arith.constant 0 : i32
    return %arg0, %c0_i32 : i32, i32
  }
  func.func @transform_1(%arg0: i32) -> (i32, i32) {
    %c0_i32 = arith.constant 0 : i32
    %c0_i32_0 = arith.constant 0 : i32
    %c0_i32_1 = arith.constant 0 : i32
    return %c0_i32, %c0_i32_0 : i32, i32
  }
  func.func @transform_2(%arg0: i32) -> (i32, i32) {
    %c0_i32 = arith.constant 0 : i32
    %c0_i32_0 = arith.constant 0 : i32
    %c0_i32_1 = arith.constant 0 : i32
    return %c0_i32, %c0_i32_0 : i32, i32
  }
  func.func @transform_3(%arg0: i32) -> (i32, i32) {
    %c0_i32 = arith.constant 0 : i32
    %c0_i32_0 = arith.constant 0 : i32
    %c0_i32_1 = arith.constant 0 : i32
    return %c0_i32, %c0_i32_0 : i32, i32
  }
  func.func @transform_4(%arg0: i32) -> (i32, i32) {
    %c0_i32 = arith.constant 0 : i32
    %c0_i32_0 = arith.constant 0 : i32
    %c0_i32_1 = arith.constant 0 : i32
    return %c0_i32, %c0_i32_0 : i32, i32
  }
  func.func @transform_5(%arg0: i32) -> (i32, i32) {
    %c0_i32 = arith.constant 0 : i32
    %c0_i32_0 = arith.constant 0 : i32
    return %arg0, %c0_i32 : i32, i32
  }
  func.func @transform_6(%arg0: i32) -> (i32, i32) {
    %c0_i32 = arith.constant 0 : i32
    %c0_i32_0 = arith.constant 0 : i32
    %c0_i32_1 = arith.constant 0 : i32
    return %c0_i32, %c0_i32_0 : i32, i32
  }
  func.func @transform_7(%arg0: i32) -> (i32, i32) {
    %c0_i32 = arith.constant 0 : i32
    %c0_i32_0 = arith.constant 0 : i32
    %c0_i32_1 = arith.constant 0 : i32
    return %c0_i32, %c0_i32_0 : i32, i32
  }
  func.func @transform_8(%arg0: i32) -> (i32, i32) {
    %c0_i32 = arith.constant 0 : i32
    %c0_i32_0 = arith.constant 0 : i32
    %c0_i32_1 = arith.constant 0 : i32
    return %c0_i32, %c0_i32_0 : i32, i32
  }
  func.func @transform_9(%arg0: i32) -> (i32, i32) {
    %c0_i32 = arith.constant 0 : i32
    %c0_i32_0 = arith.constant 0 : i32
    %c0_i32_1 = arith.constant 0 : i32
    return %c0_i32, %c0_i32_0 : i32, i32
  }
  func.func @transform_10(%arg0: i32) -> (i32, i32) {
    %c0_i32 = arith.constant 0 : i32
    %c0_i32_0 = arith.constant 0 : i32
    return %arg0, %c0_i32 : i32, i32
  }
  func.func @transform_11(%arg0: i32) -> (i32, i32) {
    %c0_i32 = arith.constant 0 : i32
    %c0_i32_0 = arith.constant 0 : i32
    return %arg0, %c0_i32 : i32, i32
  }
  func.func @transform_12(%arg0: i32) -> (i32, i32) {
    %c0_i32 = arith.constant 0 : i32
    %c0_i32_0 = arith.constant 0 : i32
    return %arg0, %c0_i32 : i32, i32
  }
}

</mosaic_0001>

<bundles_post_ra>
// kernel: tpu_custom_call.1
= control target key start
LH: loop header
LB: loop body
LE: loop exit
PB: predicated region body
PF: predicated region fallthrough
CT: control target
= control target key end

     0   :  { %18 = vsyncpa [#allocation3], 0  ;;  %v696_v3 = vmov 0.0|0.0   ;;  %vm697_vm0 = vmmov 0   ;;  %v698_v6 = vmov 0.0   ;;  %s950_s0 = inlined_call_operand.vmem [shape: f32[8,64], index: 0, kind: input, shape index: {}]   ;;  %s951_s1 = inlined_call_operand.vmem [shape: f32[64,32], index: 1, kind: input, shape index: {}]   ;;  %s952_s2 = inlined_call_operand.vmem [shape: f32[1,32], index: 2, kind: input, shape index: {}]   ;;  %s953_s3 = inlined_call_operand.vmem [shape: f32[32,256], index: 3, kind: input, shape index: {}]   ;;  %s954_s4 = inlined_call_operand.vmem [shape: f32[1,256], index: 4, kind: input, shape index: {}]   ;;  %s955_s5 = inlined_call_operand.vmem [shape: f32[8,128], index: 5, kind: input, shape index: {}]   ;;  %s956_s6 = inlined_call_operand.vmem [shape: f32[128,32], index: 6, kind: input, shape index: {}]   ;;  %s957_s7 = inlined_call_operand.vmem [shape: f32[1,32], index: 7, kind: input, shape index: {}]   ;;  %s958_s8 = inlined_call_operand.vmem [shape: f32[32,64], index: 8, kind: input, shape index: {}]   ;;  %s959_s9 = inlined_call_operand.vmem [shape: f32[1,64], index: 9, kind: input, shape index: {}]   ;;  %s960_s10 = inlined_call_operand.hbm [shape: f32[8,128], index: 10, kind: output, shape index: {0}]   ;;  %s961_s11 = inlined_call_operand.hbm [shape: f32[8,256], index: 11, kind: output, shape index: {1}]   ;;  %s962_s12 = inlined_call_operand.hbm [shape: f32[8,64], index: 12, kind: output, shape index: {2}]  }
   0x1   :  { %v41_v0 = vld [vmem:[%s951_s1] sm:$0xff]  ;;  %v42_v1 = vld [vmem:[%s951_s1 + $0x8] sm:$0xff]  ;;  %v43_v2 = vld [vmem:[%s951_s1 + $0x10] sm:$0xff]  ;;  %564 = vmatprep.subr.bf16.mxu0 %v696_v3  ;;  %515 = vmatprep.mubr.msk.f32.mxu0 %vm697_vm0, %v698_v6 }
   0x2   :  { %v565_v4 = vpack.c.bf16 %v42_v1, %v41_v0  ;;  %v44_v5 = vld [vmem:[%s951_s1 + $0x18] sm:$0xff]  ;;  %584 = vmatprep.subr.bf16.mxu1 %v696_v3  ;;  %550 = vmatprep.mubr.msk.f32.mxu1 %vm697_vm0, %v698_v6  ;;  %v45_v8 = vld [vmem:[%s951_s1 + $0x20] sm:$0xff]  ;;  %v46_v9 = vld [vmem:[%s951_s1 + $0x28] sm:$0xff] }
   0x3   :  { %v568_v7 = vpack.c.bf16 %v44_v5, %v43_v2 }
   0x4   :  { %566 = vmatpush3.bf16.msra.mxu0 %v565_v4 }
   0x5   :  { %567 = vmatprep.subr.bf16.mxu0 %v696_v3 }
   0x6   :  { %19 = vsyncpa [#allocation5], 0  ;;  %v571_v10 = vpack.c.bf16 %v46_v9, %v45_v8  ;;  %v47_v11 = vld [vmem:[%s951_s1 + $0x30] sm:$0xff]  ;;  %v48_v12 = vld [vmem:[%s951_s1 + $0x38] sm:$0xff]  ;;  %vm56_vm1 = vcmask 523264   ;;  %vm151_vm2 = vcmask 261120   ;;  %v141_v59 = vlaneseq }
   0x7   :  { %v132_v13 = vld [vmem:[%s953_s3 + $0x8] sm:$0xff]  ;;  %v134_v14 = vld [vmem:[%s953_s3 + $0x18] sm:$0xff]  ;;  %v574_v15 = vpack.c.bf16 %v48_v12, %v47_v11  ;;  %v131_v17 = vld [vmem:[%s953_s3] sm:$0xff]  ;;  %s700_s20 = smov [#allocation2]  }
   0x8   :  { %569 = vmatpush3.bf16.msra.mxu0 %v568_v7  ;;  %v576_v16 = vpack.c.bf16 %v134_v14, %v132_v13  ;;  %v133_v18 = vld [vmem:[%s953_s3 + $0x10] sm:$0xff]  ;;  %v40_v19 = vld [vmem:[%s950_s0] sm:$0xff]  ;;  %v136_v21 = vld [vmem:[%s953_s3 + $0x28] sm:$0xff]  ;;  %v142_v60 = vshrl.u32 %v141_v59, 7  ;;  %s426_s21 = sshll.u32 %s700_s20, 4  ;;  %s427_s21 = int_to_ptr.vmem [resolvable:$true] %s426_s21 }
   0x9   :  { %570 = vmatprep.subr.bf16.mxu0 %v696_v3  ;;  %v578_v20 = vpack.c.bf16 %v133_v18, %v131_v17  ;;  %v138_v22 = vld [vmem:[%s953_s3 + $0x38] sm:$0xff]  ;;  %v135_v24 = vld [vmem:[%s953_s3 + $0x20] sm:$0xff]  ;;  %v137_v25 = vld [vmem:[%s953_s3 + $0x30] sm:$0xff] }
   0xa   :  { %v580_v23 = vpack.c.bf16 %v138_v22, %v136_v21  ;;  %v582_v26 = vpack.c.bf16 %v137_v25, %v135_v24  ;;  %v232_v27 = vld [vmem:[%s956_s6] sm:$0xff]  ;;  %v233_v28 = vld [vmem:[%s956_s6 + $0x8] sm:$0xff]  ;;  %v234_v29 = vld [vmem:[%s956_s6 + $0x10] sm:$0xff]  ;;  %v143_v61 = vsub.s32 0, %v142_v60  ;;  %v147_v63 = vsub.s32 1, %v142_v60 }
   0xb   :  { %v585_v30 = vpack.c.bf16 %v233_v28, %v232_v27  ;;  %v235_v31 = vld [vmem:[%s956_s6 + $0x18] sm:$0xff]  ;;  %v461_v33 = vld [vmem:[%s952_s2] ss:$0 sm:$0xff]  ;;  %v237_v39 = vld [vmem:[%s956_s6 + $0x28] sm:$0xff] }
   0xc   :  { %572 = vmatpush3.bf16.msra.mxu0 %v571_v10  ;;  %v588_v32 = vpack.c.bf16 %v235_v31, %v234_v29  ;;  %v236_v38 = vld [vmem:[%s956_s6 + $0x20] sm:$0xff]  ;;  %v238_v41 = vld [vmem:[%s956_s6 + $0x30] sm:$0xff]  ;;  %v239_v42 = vld [vmem:[%s956_s6 + $0x38] sm:$0xff] }
   0xd   :  { %573 = vmatprep.subr.bf16.mxu0 %v696_v3  ;;  %586 = vmatpush3.bf16.msra.mxu1 %v585_v30  ;;  %v591_v40 = vpack.c.bf16 %v237_v39, %v236_v38  ;;  %v594_v43 = vpack.c.bf16 %v239_v42, %v238_v41  ;;  %v240_v44 = vld [vmem:[%s956_s6 + $0x40] sm:$0xff]  ;;  %v241_v45 = vld [vmem:[%s956_s6 + $0x48] sm:$0xff]  ;;  %v242_v47 = vld [vmem:[%s956_s6 + $0x50] sm:$0xff] }
   0xe   :  { %587 = vmatprep.subr.bf16.mxu1 %v696_v3  ;;  %v597_v46 = vpack.c.bf16 %v241_v45, %v240_v44  ;;  %v243_v48 = vld [vmem:[%s956_s6 + $0x58] sm:$0xff]  ;;  %v244_v50 = vld [vmem:[%s956_s6 + $0x60] sm:$0xff]  ;;  %v245_v51 = vld [vmem:[%s956_s6 + $0x68] sm:$0xff] }
   0xf   :  { %v600_v49 = vpack.c.bf16 %v243_v48, %v242_v47  ;;  %v603_v52 = vpack.c.bf16 %v245_v51, %v244_v50  ;;  %v246_v53 = vld [vmem:[%s956_s6 + $0x70] sm:$0xff]  ;;  %v247_v54 = vld [vmem:[%s956_s6 + $0x78] sm:$0xff]  ;;  %v326_v56 = vld [vmem:[%s958_s8] sm:$0xff] }
  0x10   :  { %575 = vmatpush3.bf16.msra.mxu0 %v574_v15  ;;  %v606_v55 = vpack.c.bf16 %v247_v54, %v246_v53  ;;  %v327_v57 = vld [vmem:[%s958_s8 + $0x8] sm:$0xff]  ;;  %v139_v62 = vld [vmem:[%s954_s4] sm:$0x3]  ;;  %v328_v12 = vld [vmem:[%s958_s8 + $0x10] sm:$0xff] }
  0x11   :  { %577 = vmatprep.subr.bf16.mxu0 %v576_v16  ;;  %589 = vmatpush3.bf16.msra.mxu1 %v588_v32  ;;  %v609_v58 = vpack.c.bf16 %v327_v57, %v326_v56  ;;  %v144_v0 = vrot.slane %v139_v62, %v143_v61  ;;  %v148_v1 = vrot.slane %v139_v62, %v147_v63  ;;  %v329_v13 = vld [vmem:[%s958_s8 + $0x18] sm:$0xff]  ;;  %v464_v15 = vld [vmem:[%s957_s7] ss:$0 sm:$0xff] }
  0x12   :  { %590 = vmatprep.subr.bf16.mxu1 %v696_v3  ;;  %v612_v14 = vpack.c.bf16 %v329_v13, %v328_v12 }
  0x13   :  { %516 = vmatmul.mubr.msk.f32.vlgmr.msra.gmra.mrb[0].mxu0 %vm56_vm1, %v40_v19 }
  0x14   :  { %579 = vmatpush1.bf16.msra.mxu0 %v578_v20  ;;  %219 = vmatprep.mubr.f32.mxu0 %v698_v6 }
  0x15   :  { %581 = vmatprep.subr.bf16.mxu0 %v580_v23  ;;  %592 = vmatpush3.bf16.msra.mxu1 %v591_v40 }
  0x16   :  { %593 = vmatprep.subr.bf16.mxu1 %v696_v3 }
  0x18   :  { %583 = vmatpush1.bf16.msra.mxu0 %v582_v26 }
  0x19   :  { %608 = vmatprep.subr.bf16.mxu0 %v696_v3  ;;  %595 = vmatpush3.bf16.msra.mxu1 %v594_v43 }
  0x1a   :  { %596 = vmatprep.subr.bf16.mxu1 %v696_v3 }
  0x1d   :  { %598 = vmatpush3.bf16.msra.mxu1 %v597_v46 }
  0x1e   :  { %599 = vmatprep.subr.bf16.mxu1 %v696_v3 }
  0x21   :  { %601 = vmatpush3.bf16.msra.mxu1 %v600_v49 }
  0x22   :  { %602 = vmatprep.subr.bf16.mxu1 %v696_v3 }
  0x25   :  { %604 = vmatpush3.bf16.msra.mxu1 %v603_v52 }
  0x26   :  { %605 = vmatprep.subr.bf16.mxu1 %v696_v3 }
  0x29   :  { %607 = vmatpush3.bf16.msra.mxu1 %v606_v55 }
  0xe6   :  { %v126_v34 = vpop.f32.mrb[0].mxu0 }
  0xe7   :  { %v127_v35 = vadd.f32 %v461_v33, %v126_v34  ;;  %v517_v36 = vpop.f32.mrb[1].mxu0 }
  0xe9   :  { %v130_v37 = vmax.f32 %v127_v35, 0.0 }
  0xeb   :  { %463 = vmatmul.mubr.msk.f32.vlgmr.msra.gmra.mrb[2].mxu0 %vm151_vm2, %v130_v37 }
  0xec   :  { %561 = vmatprep.mubr.msk.f32.mxu0 %vm697_vm0, %v698_v6  ;;  %610 = vmatpush3.bf16.msra.mxu0 %v609_v58 }
  0xed   :  { %611 = vmatprep.subr.bf16.mxu0 %v696_v3  ;;  %v229_v3 = vld [vmem:[%s955_s5] sm:$0xff]  ;;  %s699_s5 = smov [#allocation4]  }
  0xee   :  { %s436_s19 = sshll.u32 %s699_s5, 4  ;;  %s437_s19 = int_to_ptr.vmem [resolvable:$true] %s436_s19 }
  0xef   :  { %s626_s22 = scalar_lea.vmem %s437_s19, 256  ;;  %p631_p1 = scmp.lt.s32.totalorder %s437_s19, %s437_s19 }
  0xf0   :  { %613 = vmatpush3.bf16.msra.mxu0 %v612_v14  ;;  %p627_p0 = scmp.ne.s32.totalorder %s437_s19, %s626_s22  ;;  %p632_p2 = scmp.lt.s32.totalorder %s626_s22, %s626_s22 }
  0xf2   :  { %p633_p3 = por %p632_p2, %p631_p1 }
  0xf4   :  { %p634_p4 = pnand %p633_p3, %p627_p0 }
 0x1be   :  { %v221_v2 = vpop.f32.mrb[2].mxu0 }
 0x1bf   :  { %v222_v4 = vadd.f32 %v221_v2, %v144_v0  ;;  %v223_v5 = vpop.f32.mrb[3].mxu0 }
 0x1c0   :  { %v224_v6 = vadd.f32 %v223_v5, %v148_v1 }
 0x1c1   :  { %411 = vst [vmem:[#allocation4] sm:$0xff] %v222_v4 }
 0x1c2   :  { %v226_v7 = vmul.f32 0.5, %v224_v6  ;;  %412 = vst [vmem:[#allocation4 + $0x8] sm:$0xff] %v224_v6 }
 0x1c4   :  { %v227_v8 = vmul.f32 1.442695, %v226_v7 }
 0x1c6   :  { %620 = vpow2.f32 %v227_v8 }
 0x1d0   :  { %v621_v9 = vpop.eup %620 }
 0x1d1   :  { %v230_v10 = vmul.f32 %v621_v9, %v229_v3 }
 0x1d3   :  { %v231_v11 = vadd.f32 %v230_v10, %v222_v4 }
 0x1d5   :  { %551 = vmatmul.mubr.f32.vlgmr.msra.gmra.mrb[0].mxu1 %v231_v11  ;;  %410 = vst [vmem:[#allocation2] sm:$0xff] %v231_v11 }
 0x2a8   :  { %v321_v16 = vpop.f32.mrb[0].mxu1 }
 0x2a9   :  { %v322_v17 = vadd.f32 %v464_v15, %v321_v16  ;;  %v552_v18 = vpop.f32.mrb[1].mxu1 }
 0x2ab   :  { %v325_v19 = vmax.f32 %v322_v17, 0.0 }
 0x2ad   :  { %562 = vmatmul.mubr.msk.f32.vlgmr.msra.gmra.mrb[4].mxu0 %vm151_vm2, %v325_v19 }
 0x2ae   :  { %637 = shalt.err (!%p634_p4)
}
 0x2af   :  { %s638_s23 = scalar_lea.hbm %s961_s11, 256 }
 0x2b0   :  { %p639_p5 = scmp.ne.s32.totalorder %s961_s11, %s638_s23  ;;  %p642_p6 = scmp.lt.u32.totalorder %s638_s23, %s961_s11 }
 0x2b2   :  { %p644_p7 = pnand %p642_p6, %p639_p5 }
 0x2b4   :  { %647 = shalt.err (!%p644_p7)
}
 0x2b5   :  { %439 = dma.vmem_to_hbm [thread:$0]  %s437_s19, 256, %s961_s11, [#allocation5]  }
 0x2b6   :  { %s648_s28 = scalar_lea.vmem %s427_s21, 128  ;;  %p653_p9 = scmp.lt.s32.totalorder %s427_s21, %s427_s21 }
 0x2b7   :  { %p649_p8 = scmp.ne.s32.totalorder %s427_s21, %s648_s28  ;;  %p654_p10 = scmp.lt.s32.totalorder %s648_s28, %s648_s28 }
 0x2b9   :  { %p655_p11 = por %p654_p10, %p653_p9 }
 0x2bb   :  { %p656_p12 = pnand %p655_p11, %p649_p8 }
 0x2bd   :  { %659 = shalt.err (!%p656_p12)
}
 0x2be   :  { %s660_s6 = scalar_lea.hbm %s960_s10, 128 }
 0x2bf   :  { %p661_p13 = scmp.ne.s32.totalorder %s960_s10, %s660_s6  ;;  %p664_p0 = scmp.lt.u32.totalorder %s660_s6, %s960_s10 }
 0x2c1   :  { %p666_p1 = pnand %p664_p0, %p661_p13 }
 0x2c3   :  { %669 = shalt.err (!%p666_p1)
}
 0x2c4   :  { %429 = dma.vmem_to_hbm [thread:$0]  %s427_s21, 128, %s960_s10, [#allocation3]   ;;  %v465_v20 = vld [vmem:[%s959_s9] ss:$0 sm:$0xff] }
 0x2c5   :  { %s701_s17 = smov [#allocation6]  }
 0x2c6   :  { %s446_s18 = sshll.u32 %s701_s17, 4  ;;  %s447_s18 = int_to_ptr.vmem [resolvable:$true] %s446_s18 }
 0x2c7   :  { %s670_s5 = scalar_lea.vmem %s447_s18, 128  ;;  %p675_p3 = scmp.lt.s32.totalorder %s447_s18, %s447_s18 }
 0x2c8   :  { %p671_p2 = scmp.ne.s32.totalorder %s447_s18, %s670_s5  ;;  %p676_p4 = scmp.lt.s32.totalorder %s670_s5, %s670_s5 }
 0x2ca   :  { %p677_p5 = por %p676_p4, %p675_p3 }
 0x2cc   :  { %p678_p6 = pnand %p677_p5, %p671_p2 }
 0x380   :  { %v406_v21 = vpop.f32.mrb[4].mxu0 }
 0x381   :  { %v407_v22 = vadd.f32 %v465_v20, %v406_v21  ;;  %v563_v23 = vpop.f32.mrb[5].mxu0 }
 0x383   :  { %v467_v24 = vmul.f32 -1.442695, %v407_v22 }
 0x385   :  { %622 = vpow2.f32 %v467_v24 }
 0x38f   :  { %v623_v25 = vpop.eup %622 }
 0x390   :  { %v416_v26 = vadd.f32 1.0, %v623_v25 }
 0x392   :  { %624 = vrcp.f32 %v416_v26 }
 0x39c   :  { %v625_v27 = vpop.eup %624 }
 0x39d   :  { %419 = vst.msk [vmem:[#allocation6] sm:$0xff] %vm56_vm1, %v625_v27 }
 0x39e   :  { %681 = shalt.err (!%p678_p6)
}
 0x39f   :  { %s682_s19 = scalar_lea.hbm %s962_s12, 128 }
 0x3a0   :  { %p683_p7 = scmp.ne.s32.totalorder %s962_s12, %s682_s19  ;;  %p686_p8 = scmp.lt.u32.totalorder %s682_s19, %s962_s12 }
 0x3a2   :  { %p688_p9 = pnand %p686_p8, %p683_p7 }
 0x3a4   :  { %691 = shalt.err (!%p688_p9)
}
 0x3a5   :  { %449 = dma.vmem_to_hbm [thread:$0]  %s447_s18, 128, %s962_s12, [#allocation5]  }
 0x3a6   :  { %692 = dma.done.wait [#allocation3], 128  }
 0x3a7   :  { %693 = vsyncadd [#allocation3], 4294967168 }
 0x3a8   :  { %694 = dma.done.wait [#allocation5], 384  }
 0x3a9   :  { %695 = vsyncadd [#allocation5], 4294966912 }
 0x3aa   :  { %459 = vsyncpa [#allocation3], 1 }
 0x3ab   :  { %460 = vsyncpa [#allocation5], 1 }

// kernel: tpu_custom_call.1
= control target key start
LH: loop header
LB: loop body
LE: loop exit
PB: predicated region body
PF: predicated region fallthrough
CT: control target
= control target key end

     0   :  { %18 = vsyncpa [#allocation3], 0  ;;  %v696_v3 = vmov 0.0|0.0   ;;  %vm697_vm0 = vmmov 0   ;;  %v698_v6 = vmov 0.0   ;;  %s950_s0 = inlined_call_operand.vmem [shape: f32[8,64], index: 0, kind: input, shape index: {}]   ;;  %s951_s1 = inlined_call_operand.vmem [shape: f32[64,32], index: 1, kind: input, shape index: {}]   ;;  %s952_s2 = inlined_call_operand.vmem [shape: f32[1,32], index: 2, kind: input, shape index: {}]   ;;  %s953_s3 = inlined_call_operand.vmem [shape: f32[32,256], index: 3, kind: input, shape index: {}]   ;;  %s954_s4 = inlined_call_operand.vmem [shape: f32[1,256], index: 4, kind: input, shape index: {}]   ;;  %s955_s5 = inlined_call_operand.vmem [shape: f32[8,128], index: 5, kind: input, shape index: {}]   ;;  %s956_s6 = inlined_call_operand.vmem [shape: f32[128,32], index: 6, kind: input, shape index: {}]   ;;  %s957_s7 = inlined_call_operand.vmem [shape: f32[1,32], index: 7, kind: input, shape index: {}]   ;;  %s958_s8 = inlined_call_operand.vmem [shape: f32[32,64], index: 8, kind: input, shape index: {}]   ;;  %s959_s9 = inlined_call_operand.vmem [shape: f32[1,64], index: 9, kind: input, shape index: {}]   ;;  %s960_s10 = inlined_call_operand.hbm [shape: f32[8,128], index: 10, kind: output, shape index: {0}]   ;;  %s961_s11 = inlined_call_operand.hbm [shape: f32[8,256], index: 11, kind: output, shape index: {1}]   ;;  %s962_s12 = inlined_call_operand.hbm [shape: f32[8,64], index: 12, kind: output, shape index: {2}]  }
   0x1   :  { %v41_v0 = vld [vmem:[%s951_s1] sm:$0xff]  ;;  %v42_v1 = vld [vmem:[%s951_s1 + $0x8] sm:$0xff]  ;;  %v43_v2 = vld [vmem:[%s951_s1 + $0x10] sm:$0xff]  ;;  %564 = vmatprep.subr.bf16.mxu0 %v696_v3  ;;  %515 = vmatprep.mubr.msk.f32.mxu0 %vm697_vm0, %v698_v6 }
   0x2   :  { %v565_v4 = vpack.c.bf16 %v42_v1, %v41_v0  ;;  %v44_v5 = vld [vmem:[%s951_s1 + $0x18] sm:$0xff]  ;;  %584 = vmatprep.subr.bf16.mxu1 %v696_v3  ;;  %550 = vmatprep.mubr.msk.f32.mxu1 %vm697_vm0, %v698_v6  ;;  %v45_v8 = vld [vmem:[%s951_s1 + $0x20] sm:$0xff]  ;;  %v46_v9 = vld [vmem:[%s951_s1 + $0x28] sm:$0xff] }
   0x3   :  { %v568_v7 = vpack.c.bf16 %v44_v5, %v43_v2 }
   0x4   :  { %566 = vmatpush3.bf16.msra.mxu0 %v565_v4 }
   0x5   :  { %567 = vmatprep.subr.bf16.mxu0 %v696_v3 }
   0x6   :  { %19 = vsyncpa [#allocation5], 0  ;;  %v571_v10 = vpack.c.bf16 %v46_v9, %v45_v8  ;;  %v47_v11 = vld [vmem:[%s951_s1 + $0x30] sm:$0xff]  ;;  %v48_v12 = vld [vmem:[%s951_s1 + $0x38] sm:$0xff]  ;;  %vm56_vm1 = vcmask 523264   ;;  %vm151_vm2 = vcmask 261120   ;;  %v141_v59 = vlaneseq }
   0x7   :  { %v132_v13 = vld [vmem:[%s953_s3 + $0x8] sm:$0xff]  ;;  %v134_v14 = vld [vmem:[%s953_s3 + $0x18] sm:$0xff]  ;;  %v574_v15 = vpack.c.bf16 %v48_v12, %v47_v11  ;;  %v131_v17 = vld [vmem:[%s953_s3] sm:$0xff]  ;;  %s700_s20 = smov [#allocation2]  }
   0x8   :  { %569 = vmatpush3.bf16.msra.mxu0 %v568_v7  ;;  %v576_v16 = vpack.c.bf16 %v134_v14, %v132_v13  ;;  %v133_v18 = vld [vmem:[%s953_s3 + $0x10] sm:$0xff]  ;;  %v40_v19 = vld [vmem:[%s950_s0] sm:$0xff]  ;;  %v136_v21 = vld [vmem:[%s953_s3 + $0x28] sm:$0xff]  ;;  %v142_v60 = vshrl.u32 %v141_v59, 7  ;;  %s426_s21 = sshll.u32 %s700_s20, 4  ;;  %s427_s21 = int_to_ptr.vmem [resolvable:$true] %s426_s21 }
   0x9   :  { %570 = vmatprep.subr.bf16.mxu0 %v696_v3  ;;  %v578_v20 = vpack.c.bf16 %v133_v18, %v131_v17  ;;  %v138_v22 = vld [vmem:[%s953_s3 + $0x38] sm:$0xff]  ;;  %v135_v24 = vld [vmem:[%s953_s3 + $0x20] sm:$0xff]  ;;  %v137_v25 = vld [vmem:[%s953_s3 + $0x30] sm:$0xff] }
   0xa   :  { %v580_v23 = vpack.c.bf16 %v138_v22, %v136_v21  ;;  %v582_v26 = vpack.c.bf16 %v137_v25, %v135_v24  ;;  %v232_v27 = vld [vmem:[%s956_s6] sm:$0xff]  ;;  %v233_v28 = vld [vmem:[%s956_s6 + $0x8] sm:$0xff]  ;;  %v234_v29 = vld [vmem:[%s956_s6 + $0x10] sm:$0xff]  ;;  %v143_v61 = vsub.s32 0, %v142_v60  ;;  %v147_v63 = vsub.s32 1, %v142_v60 }
   0xb   :  { %v585_v30 = vpack.c.bf16 %v233_v28, %v232_v27  ;;  %v235_v31 = vld [vmem:[%s956_s6 + $0x18] sm:$0xff]  ;;  %v461_v33 = vld [vmem:[%s952_s2] ss:$0 sm:$0xff]  ;;  %v237_v39 = vld [vmem:[%s956_s6 + $0x28] sm:$0xff] }
   0xc   :  { %572 = vmatpush3.bf16.msra.mxu0 %v571_v10  ;;  %v588_v32 = vpack.c.bf16 %v235_v31, %v234_v29  ;;  %v236_v38 = vld [vmem:[%s956_s6 + $0x20] sm:$0xff]  ;;  %v238_v41 = vld [vmem:[%s956_s6 + $0x30] sm:$0xff]  ;;  %v239_v42 = vld [vmem:[%s956_s6 + $0x38] sm:$0xff] }
   0xd   :  { %573 = vmatprep.subr.bf16.mxu0 %v696_v3  ;;  %586 = vmatpush3.bf16.msra.mxu1 %v585_v30  ;;  %v591_v40 = vpack.c.bf16 %v237_v39, %v236_v38  ;;  %v594_v43 = vpack.c.bf16 %v239_v42, %v238_v41  ;;  %v240_v44 = vld [vmem:[%s956_s6 + $0x40] sm:$0xff]  ;;  %v241_v45 = vld [vmem:[%s956_s6 + $0x48] sm:$0xff]  ;;  %v242_v47 = vld [vmem:[%s956_s6 + $0x50] sm:$0xff] }
   0xe   :  { %587 = vmatprep.subr.bf16.mxu1 %v696_v3  ;;  %v597_v46 = vpack.c.bf16 %v241_v45, %v240_v44  ;;  %v243_v48 = vld [vmem:[%s956_s6 + $0x58] sm:$0xff]  ;;  %v244_v50 = vld [vmem:[%s956_s6 + $0x60] sm:$0xff]  ;;  %v245_v51 = vld [vmem:[%s956_s6 + $0x68] sm:$0xff] }
   0xf   :  { %v600_v49 = vpack.c.bf16 %v243_v48, %v242_v47  ;;  %v603_v52 = vpack.c.bf16 %v245_v51, %v244_v50  ;;  %v246_v53 = vld [vmem:[%s956_s6 + $0x70] sm:$0xff]  ;;  %v247_v54 = vld [vmem:[%s956_s6 + $0x78] sm:$0xff]  ;;  %v326_v56 = vld [vmem:[%s958_s8] sm:$0xff] }
  0x10   :  { %575 = vmatpush3.bf16.msra.mxu0 %v574_v15  ;;  %v606_v55 = vpack.c.bf16 %v247_v54, %v246_v53  ;;  %v327_v57 = vld [vmem:[%s958_s8 + $0x8] sm:$0xff]  ;;  %v139_v62 = vld [vmem:[%s954_s4] sm:$0x3]  ;;  %v328_v12 = vld [vmem:[%s958_s8 + $0x10] sm:$0xff] }
  0x11   :  { %577 = vmatprep.subr.bf16.mxu0 %v576_v16  ;;  %589 = vmatpush3.bf16.msra.mxu1 %v588_v32  ;;  %v609_v58 = vpack.c.bf16 %v327_v57, %v326_v56  ;;  %v144_v0 = vrot.slane %v139_v62, %v143_v61  ;;  %v148_v1 = vrot.slane %v139_v62, %v147_v63  ;;  %v329_v13 = vld [vmem:[%s958_s8 + $0x18] sm:$0xff]  ;;  %v464_v15 = vld [vmem:[%s957_s7] ss:$0 sm:$0xff] }
  0x12   :  { %590 = vmatprep.subr.bf16.mxu1 %v696_v3  ;;  %v612_v14 = vpack.c.bf16 %v329_v13, %v328_v12 }
  0x13   :  { %516 = vmatmul.mubr.msk.f32.vlgmr.msra.gmra.mrb[0].mxu0 %vm56_vm1, %v40_v19 }
  0x14   :  { %579 = vmatpush1.bf16.msra.mxu0 %v578_v20  ;;  %219 = vmatprep.mubr.f32.mxu0 %v698_v6 }
  0x15   :  { %581 = vmatprep.subr.bf16.mxu0 %v580_v23  ;;  %592 = vmatpush3.bf16.msra.mxu1 %v591_v40 }
  0x16   :  { %593 = vmatprep.subr.bf16.mxu1 %v696_v3 }
  0x18   :  { %583 = vmatpush1.bf16.msra.mxu0 %v582_v26 }
  0x19   :  { %608 = vmatprep.subr.bf16.mxu0 %v696_v3  ;;  %595 = vmatpush3.bf16.msra.mxu1 %v594_v43 }
  0x1a   :  { %596 = vmatprep.subr.bf16.mxu1 %v696_v3 }
  0x1d   :  { %598 = vmatpush3.bf16.msra.mxu1 %v597_v46 }
  0x1e   :  { %599 = vmatprep.subr.bf16.mxu1 %v696_v3 }
  0x21   :  { %601 = vmatpush3.bf16.msra.mxu1 %v600_v49 }
  0x22   :  { %602 = vmatprep.subr.bf16.mxu1 %v696_v3 }
  0x25   :  { %604 = vmatpush3.bf16.msra.mxu1 %v603_v52 }
  0x26   :  { %605 = vmatprep.subr.bf16.mxu1 %v696_v3 }
  0x29   :  { %607 = vmatpush3.bf16.msra.mxu1 %v606_v55 }
  0xe6   :  { %v126_v34 = vpop.f32.mrb[0].mxu0 }
  0xe7   :  { %v127_v35 = vadd.f32 %v461_v33, %v126_v34  ;;  %v517_v36 = vpop.f32.mrb[1].mxu0 }
  0xe9   :  { %v130_v37 = vmax.f32 %v127_v35, 0.0 }
  0xeb   :  { %463 = vmatmul.mubr.msk.f32.vlgmr.msra.gmra.mrb[2].mxu0 %vm151_vm2, %v130_v37 }
  0xec   :  { %561 = vmatprep.mubr.msk.f32.mxu0 %vm697_vm0, %v698_v6  ;;  %610 = vmatpush3.bf16.msra.mxu0 %v609_v58 }
  0xed   :  { %611 = vmatprep.subr.bf16.mxu0 %v696_v3  ;;  %v229_v3 = vld [vmem:[%s955_s5] sm:$0xff]  ;;  %s699_s5 = smov [#allocation4]  }
  0xee   :  { %s436_s19 = sshll.u32 %s699_s5, 4  ;;  %s437_s19 = int_to_ptr.vmem [resolvable:$true] %s436_s19 }
  0xef   :  { %s626_s22 = scalar_lea.vmem %s437_s19, 256  ;;  %p631_p1 = scmp.lt.s32.totalorder %s437_s19, %s437_s19 }
  0xf0   :  { %613 = vmatpush3.bf16.msra.mxu0 %v612_v14  ;;  %p627_p0 = scmp.ne.s32.totalorder %s437_s19, %s626_s22  ;;  %p632_p2 = scmp.lt.s32.totalorder %s626_s22, %s626_s22 }
  0xf2   :  { %p633_p3 = por %p632_p2, %p631_p1 }
  0xf4   :  { %p634_p4 = pnand %p633_p3, %p627_p0 }
 0x1be   :  { %v221_v2 = vpop.f32.mrb[2].mxu0 }
 0x1bf   :  { %v222_v4 = vadd.f32 %v221_v2, %v144_v0  ;;  %v223_v5 = vpop.f32.mrb[3].mxu0 }
 0x1c0   :  { %v224_v6 = vadd.f32 %v223_v5, %v148_v1 }
 0x1c1   :  { %411 = vst [vmem:[#allocation4] sm:$0xff] %v222_v4 }
 0x1c2   :  { %v226_v7 = vmul.f32 0.5, %v224_v6  ;;  %412 = vst [vmem:[#allocation4 + $0x8] sm:$0xff] %v224_v6 }
 0x1c4   :  { %v227_v8 = vmul.f32 1.442695, %v226_v7 }
 0x1c6   :  { %620 = vpow2.f32 %v227_v8 }
 0x1d0   :  { %v621_v9 = vpop.eup %620 }
 0x1d1   :  { %v230_v10 = vmul.f32 %v621_v9, %v229_v3 }
 0x1d3   :  { %v231_v11 = vadd.f32 %v230_v10, %v222_v4 }
 0x1d5   :  { %551 = vmatmul.mubr.f32.vlgmr.msra.gmra.mrb[0].mxu1 %v231_v11  ;;  %410 = vst [vmem:[#allocation2] sm:$0xff] %v231_v11 }
 0x2a8   :  { %v321_v16 = vpop.f32.mrb[0].mxu1 }
 0x2a9   :  { %v322_v17 = vadd.f32 %v464_v15, %v321_v16  ;;  %v552_v18 = vpop.f32.mrb[1].mxu1 }
 0x2ab   :  { %v325_v19 = vmax.f32 %v322_v17, 0.0 }
 0x2ad   :  { %562 = vmatmul.mubr.msk.f32.vlgmr.msra.gmra.mrb[4].mxu0 %vm151_vm2, %v325_v19 }
 0x2ae   :  { %637 = shalt.err (!%p634_p4)
}
 0x2af   :  { %s638_s23 = scalar_lea.hbm %s961_s11, 256 }
 0x2b0   :  { %p639_p5 = scmp.ne.s32.totalorder %s961_s11, %s638_s23  ;;  %p642_p6 = scmp.lt.u32.totalorder %s638_s23, %s961_s11 }
 0x2b2   :  { %p644_p7 = pnand %p642_p6, %p639_p5 }
 0x2b4   :  { %647 = shalt.err (!%p644_p7)
}
 0x2b5   :  { %439 = dma.vmem_to_hbm [thread:$0]  %s437_s19, 256, %s961_s11, [#allocation5]  }
 0x2b6   :  { %s648_s28 = scalar_lea.vmem %s427_s21, 128  ;;  %p653_p9 = scmp.lt.s32.totalorder %s427_s21, %s427_s21 }
 0x2b7   :  { %p649_p8 = scmp.ne.s32.totalorder %s427_s21, %s648_s28  ;;  %p654_p10 = scmp.lt.s32.totalorder %s648_s28, %s648_s28 }
 0x2b9   :  { %p655_p11 = por %p654_p10, %p653_p9 }
 0x2bb   :  { %p656_p12 = pnand %p655_p11, %p649_p8 }
 0x2bd   :  { %659 = shalt.err (!%p656_p12)
}
 0x2be   :  { %s660_s6 = scalar_lea.hbm %s960_s10, 128 }
 0x2bf   :  { %p661_p13 = scmp.ne.s32.totalorder %s960_s10, %s660_s6  ;;  %p664_p0 = scmp.lt.u32.totalorder %s660_s6, %s960_s10 }
 0x2c1   :  { %p666_p1 = pnand %p664_p0, %p661_p13 }
 0x2c3   :  { %669 = shalt.err (!%p666_p1)
}
 0x2c4   :  { %429 = dma.vmem_to_hbm [thread:$0]  %s427_s21, 128, %s960_s10, [#allocation3]   ;;  %v465_v20 = vld [vmem:[%s959_s9] ss:$0 sm:$0xff] }
 0x2c5   :  { %s701_s17 = smov [#allocation6]  }
 0x2c6   :  { %s446_s18 = sshll.u32 %s701_s17, 4  ;;  %s447_s18 = int_to_ptr.vmem [resolvable:$true] %s446_s18 }
 0x2c7   :  { %s670_s5 = scalar_lea.vmem %s447_s18, 128  ;;  %p675_p3 = scmp.lt.s32.totalorder %s447_s18, %s447_s18 }
 0x2c8   :  { %p671_p2 = scmp.ne.s32.totalorder %s447_s18, %s670_s5  ;;  %p676_p4 = scmp.lt.s32.totalorder %s670_s5, %s670_s5 }
 0x2ca   :  { %p677_p5 = por %p676_p4, %p675_p3 }
 0x2cc   :  { %p678_p6 = pnand %p677_p5, %p671_p2 }
 0x380   :  { %v406_v21 = vpop.f32.mrb[4].mxu0 }
 0x381   :  { %v407_v22 = vadd.f32 %v465_v20, %v406_v21  ;;  %v563_v23 = vpop.f32.mrb[5].mxu0 }
 0x383   :  { %v467_v24 = vmul.f32 -1.442695, %v407_v22 }
 0x385   :  { %622 = vpow2.f32 %v467_v24 }
 0x38f   :  { %v623_v25 = vpop.eup %622 }
 0x390   :  { %v416_v26 = vadd.f32 1.0, %v623_v25 }
 0x392   :  { %624 = vrcp.f32 %v416_v26 }
 0x39c   :  { %v625_v27 = vpop.eup %624 }
 0x39d   :  { %419 = vst.msk [vmem:[#allocation6] sm:$0xff] %vm56_vm1, %v625_v27 }
 0x39e   :  { %681 = shalt.err (!%p678_p6)
}
 0x39f   :  { %s682_s19 = scalar_lea.hbm %s962_s12, 128 }
 0x3a0   :  { %p683_p7 = scmp.ne.s32.totalorder %s962_s12, %s682_s19  ;;  %p686_p8 = scmp.lt.u32.totalorder %s682_s19, %s962_s12 }
 0x3a2   :  { %p688_p9 = pnand %p686_p8, %p683_p7 }
 0x3a4   :  { %691 = shalt.err (!%p688_p9)
}
 0x3a5   :  { %449 = dma.vmem_to_hbm [thread:$0]  %s447_s18, 128, %s962_s12, [#allocation5]  }
 0x3a6   :  { %692 = dma.done.wait [#allocation3], 128  }
 0x3a7   :  { %693 = vsyncadd [#allocation3], 4294967168 }
 0x3a8   :  { %694 = dma.done.wait [#allocation5], 384  }
 0x3a9   :  { %695 = vsyncadd [#allocation5], 4294966912 }
 0x3aa   :  { %459 = vsyncpa [#allocation3], 1 }
 0x3ab   :  { %460 = vsyncpa [#allocation5], 1 }

</bundles_post_ra>
